<compile_context>
chip_gen: v6e
topology: v6e:2x2x1
jax: 0.10.0
libtpu: 0.0.40
codegen_flags: <defaults>
</compile_context>

<pallas_src>
import functools

import jax
import jax.numpy as jnp
from jax.experimental import pallas as pl
from jax.experimental.pallas import tpu as pltpu


def _mean_position_loss_kernel(yh_ref, y_ref, fh_ref, fl_ref, o_ref,
                               acc_pos, acc_flr, *,
                               cols_pos, cols_flr, mask_tail):
    """yh/y: (r, bp) blocks, fh/fl: (r, bf) blocks, o: (1, 8, 128) chunk partial."""
    i = pl.program_id(1)                      # step within this chunk
    steps = pl.num_programs(1)

    @pl.when(i == 0)
    def _init():
        acc_pos[...] = jnp.zeros_like(acc_pos)
        acc_flr[...] = jnp.zeros_like(acc_flr)

    # |a - b| == sqrt((a - b)^2) for finite inputs: VPU abs, no EUP sqrt.
    # Upcast in-kernel so bf16 inputs stream as bf16 over HBM.
    pos = jnp.abs(yh_ref[...].astype(jnp.float32) - y_ref[...].astype(jnp.float32))
    flr = jnp.abs(fh_ref[...].astype(jnp.float32) - fl_ref[...].astype(jnp.float32))

    if mask_tail:
        # Ragged tail handled in-kernel: lanes past the true extent of the
        # (un-padded) arrays in the partial boundary block are garbage.
        t = pl.program_id(0) * steps + i      # global tile index
        col_p = jax.lax.broadcasted_iota(jnp.int32, pos.shape, 1)
        col_f = jax.lax.broadcasted_iota(jnp.int32, flr.shape, 1)
        pos = jnp.where(t * pos.shape[-1] + col_p < cols_pos, pos, 0.0)
        flr = jnp.where(t * flr.shape[-1] + col_f < cols_flr, flr, 0.0)

    # Pure VPU accumulation per step; no per-step cross-lane reduce or scalar write.
    acc_pos[...] += pos
    acc_flr[...] += flr

    @pl.when(i == steps - 1)
    def _finalize():
        # Single XLU reduction + hoisted 15x scale, once per chunk.
        total = jnp.sum(acc_pos[...]) + 15.0 * jnp.sum(acc_flr[...])
        o_ref[...] = jnp.zeros(o_ref.shape, o_ref.dtype) + total


def mean_position_loss(y_hat, y, floor_hat, floor, *,
                       samples_per_tile=131072, max_chunks=2):
    """y_hat, y: (N, D); floor_hat, floor: (N,). Returns scalar f32 loss."""
    n, d = y_hat.shape

    # ---- Copy-less layout: row-major flatten, fold onto 8 sublanes if possible.
    r = 8 if n % 8 == 0 else 1
    cols_pos = (n * d) // r
    cols_flr = n // r
    yh2 = y_hat.reshape(r, cols_pos)
    y2 = y.reshape(r, cols_pos)
    fh2 = floor_hat.reshape(r, cols_flr)
    fl2 = floor.reshape(r, cols_flr)

    # ---- Block sizing (lane multiples of 128; ~0.5-1 MiB per pos buffer).
    lanes = 128
    if r == 8:
        bf_target = max(lanes, ((samples_per_tile // r) // lanes) * lanes)
    else:
        # Sublane-sparse fallback (N % 8 != 0): blocks pad 8x in VMEM, keep smaller.
        bf_target = max(lanes, (min(samples_per_tile, 16384) // lanes) * lanes)

    if cols_flr <= bf_target:
        bf, bp = cols_flr, cols_pos           # single full-extent block
        g = 1
        mask_tail = False
    else:
        bf = bf_target
        bp = bf * d
        g = pl.cdiv(cols_flr, bf)             # same block count for pos & floor
        mask_tail = (cols_flr % bf) != 0

    # ---- Optional chunking: leading "parallel" axis (dual-TC on v7x; harmless
    #      on single-TC chips).  Only when the tile count splits evenly.
    c_chunks = max_chunks if (max_chunks > 1 and g % max_chunks == 0
                              and g // max_chunks >= 2) else 1
    steps = g // c_chunks

    kernel = functools.partial(_mean_position_loss_kernel,
                               cols_pos=cols_pos, cols_flr=cols_flr,
                               mask_tail=mask_tail)

    in_bytes = 2 * n * d * y_hat.dtype.itemsize + 2 * n * floor_hat.dtype.itemsize
    cost = pl.CostEstimate(flops=3 * n * d + 3 * n, transcendentals=0,
                           bytes_accessed=in_bytes + c_chunks * 8 * 128 * 4)

    out = pl.pallas_call(
        kernel,
        out_shape=jax.ShapeDtypeStruct((c_chunks, 8, 128), jnp.float32),
        grid=(c_chunks, steps),
        in_specs=[
            pl.BlockSpec((r, bp), lambda c, i: (0, c * steps + i)),
            pl.BlockSpec((r, bp), lambda c, i: (0, c * steps + i)),
            pl.BlockSpec((r, bf), lambda c, i: (0, c * steps + i)),
            pl.BlockSpec((r, bf), lambda c, i: (0, c * steps + i)),
        ],
        out_specs=pl.BlockSpec((1, 8, 128), lambda c, i: (c, 0, 0)),
        scratch_shapes=[
            pltpu.VMEM((r, bp), jnp.float32),   # position |diff| accumulator
            pltpu.VMEM((r, bf), jnp.float32),   # floor |diff| accumulator
        ],
        compiler_params=pltpu.CompilerParams(
            dimension_semantics=("parallel", "arbitrary"),
        ),
        cost_estimate=cost,
    )(yh2, y2, fh2, fl2)

    # Per-chunk partials reduced here; single division by the true N.
    return jnp.sum(out[:, 0, 0]) / n


def _reference(y_hat, y, floor_hat, floor):
    pos_error = jnp.sum(jnp.sqrt((y_hat - y) ** 2), axis=1)
    floor_error = 15.0 * jnp.abs(floor_hat - floor)
    return jnp.mean(pos_error + floor_error)


if __name__ == "__main__":
    # Test 1: small shapes matching the module (N samples, D=(x, y)); single block.
    k1, k2, k3, k4 = jax.random.split(jax.random.PRNGKey(0), 4)
    n, d = 8, 2
    y_hat = jax.random.normal(k1, (n, d), jnp.float32) * 10.0
    y = jax.random.normal(k2, (n, d), jnp.float32) * 10.0
    floor_hat = jax.random.normal(k3, (n,), jnp.float32) * 2.0
    floor = jnp.round(jax.random.normal(k4, (n,), jnp.float32) * 2.0)

    loss = mean_position_loss(y_hat, y, floor_hat, floor)
    jax.block_until_ready(loss)
    ref = _reference(y_hat, y, floor_hat, floor)
    assert jnp.allclose(loss, ref, rtol=1e-5, atol=1e-4), (loss, ref)

    # Test 2: N not a multiple of 8 -> (1, .) fallback layout, multi-step grid,
    # in-kernel masked ragged tail.
    k5, k6, k7, k8 = jax.random.split(jax.random.PRNGKey(1), 4)
    n2, d2 = 300, 2
    y_hat2 = jax.random.normal(k5, (n2, d2), jnp.float32) * 10.0
    y2 = jax.random.normal(k6, (n2, d2), jnp.float32) * 10.0
    floor_hat2 = jax.random.normal(k7, (n2,), jnp.float32) * 2.0
    floor2 = jnp.round(jax.random.normal(k8, (n2,), jnp.float32) * 2.0)

    loss2 = mean_position_loss(y_hat2, y2, floor_hat2, floor2, samples_per_tile=128)
    jax.block_until_ready(loss2)
    ref2 = _reference(y_hat2, y2, floor_hat2, floor2)
    assert jnp.allclose(loss2, ref2, rtol=1e-5, atol=1e-4), (loss2, ref2)

    # Test 3: N multiple of 8 -> dense (8, .) layout, 2 "parallel" chunks x 2
    # accumulation steps, masked ragged tail.
    k9, k10, k11, k12 = jax.random.split(jax.random.PRNGKey(2), 4)
    n3, d3 = 4000, 2
    y_hat3 = jax.random.normal(k9, (n3, d3), jnp.float32) * 10.0
    y3 = jax.random.normal(k10, (n3, d3), jnp.float32) * 10.0
    floor_hat3 = jax.random.normal(k11, (n3,), jnp.float32) * 2.0
    floor3 = jnp.round(jax.random.normal(k12, (n3,), jnp.float32) * 2.0)

    loss3 = mean_position_loss(y_hat3, y3, floor_hat3, floor3, samples_per_tile=1024)
    jax.block_until_ready(loss3)
    ref3 = _reference(y_hat3, y3, floor_hat3, floor3)
    assert jnp.allclose(loss3, ref3, rtol=1e-5, atol=1e-4), (loss3, ref3)

    print("KERNEL_OK")
</pallas_src>

<mosaic_0001>
module attributes {stable_mosaic.version = 11 : i64} {
  func.func @_mean_position_loss_kernel(%arg0: i32, %arg1: i32, %arg2: memref<8x2xf32, #tpu.memory_space<vmem>>, %arg3: memref<8x2xf32, #tpu.memory_space<vmem>>, %arg4: memref<8x1xf32, #tpu.memory_space<vmem>>, %arg5: memref<8x1xf32, #tpu.memory_space<vmem>>, %arg6: memref<1x8x128xf32, #tpu.memory_space<vmem>>, %arg7: memref<8x2xf32, #tpu.memory_space<vmem>>, %arg8: memref<8x1xf32, #tpu.memory_space<vmem>>) attributes {dimension_semantics = [#tpu.dimension_semantics<parallel>, #tpu.dimension_semantics<arbitrary>], iteration_bounds = array<i64: 1, 1>, scalar_prefetch = 0 : i64, scratch_operands = 2 : i64, tpu.core_type = #tpu.core_type<tc>, window_params = [{transform_indices = @transform_0, window_bounds = array<i64: 8, 2>}, {transform_indices = @transform_1, window_bounds = array<i64: 8, 2>}, {transform_indices = @transform_2, window_bounds = array<i64: 8, 1>}, {transform_indices = @transform_3, window_bounds = array<i64: 8, 1>}, {transform_indices = @transform_4, window_bounds = array<i64: 1, 8, 128>}]} {
    %c0_i32 = arith.constant 0 : i32
    %0 = arith.cmpi eq, %arg1, %c0_i32 : i32
    %1 = arith.extui %0 : i1 to i32
    %c0_i32_0 = arith.constant 0 : i32
    %2 = arith.cmpi ne, %1, %c0_i32_0 : i32
    scf.if %2 {
      %cst = arith.constant 0.000000e+00 : f32
      %20 = vector.broadcast %cst : f32 to vector<8x2xf32>
      %c0_18 = arith.constant 0 : index
      %c0_19 = arith.constant 0 : index
      %21 = vector.load %arg7[%c0_18, %c0_19] : memref<8x2xf32, #tpu.memory_space<vmem>>, vector<8x2xf32>
      tpu.vector_store %arg7[%c0_18, %c0_19], %20 {strides = array<i32>} : memref<8x2xf32, #tpu.memory_space<vmem>>, vector<8x2xf32>,
      %cst_20 = arith.constant 0.000000e+00 : f32
      %22 = vector.broadcast %cst_20 : f32 to vector<8x1xf32>
      %c0_21 = arith.constant 0 : index
      %c0_22 = arith.constant 0 : index
      %23 = vector.load %arg8[%c0_21, %c0_22] : memref<8x1xf32, #tpu.memory_space<vmem>>, vector<8x1xf32>
      tpu.vector_store %arg8[%c0_21, %c0_22], %22 {strides = array<i32>} : memref<8x1xf32, #tpu.memory_space<vmem>>, vector<8x1xf32>,
    } else {
    }
    %c0 = arith.constant 0 : index
    %c0_1 = arith.constant 0 : index
    %3 = vector.load %arg2[%c0, %c0_1] : memref<8x2xf32, #tpu.memory_space<vmem>>, vector<8x2xf32>
    %c0_2 = arith.constant 0 : index
    %c0_3 = arith.constant 0 : index
    %4 = vector.load %arg3[%c0_2, %c0_3] : memref<8x2xf32, #tpu.memory_space<vmem>>, vector<8x2xf32>
    %5 = arith.subf %3, %4 : vector<8x2xf32>
    %6 = math.absf %5 : vector<8x2xf32>
    %c0_4 = arith.constant 0 : index
    %c0_5 = arith.constant 0 : index
    %7 = vector.load %arg4[%c0_4, %c0_5] : memref<8x1xf32, #tpu.memory_space<vmem>>, vector<8x1xf32>
    %c0_6 = arith.constant 0 : index
    %c0_7 = arith.constant 0 : index
    %8 = vector.load %arg5[%c0_6, %c0_7] : memref<8x1xf32, #tpu.memory_space<vmem>>, vector<8x1xf32>
    %9 = arith.subf %7, %8 : vector<8x1xf32>
    %10 = math.absf %9 : vector<8x1xf32>
    %c0_8 = arith.constant 0 : index
    %c0_9 = arith.constant 0 : index
    %11 = vector.load %arg7[%c0_8, %c0_9] : memref<8x2xf32, #tpu.memory_space<vmem>>, vector<8x2xf32>
    %12 = arith.addf %11, %6 : vector<8x2xf32>
    %c0_10 = arith.constant 0 : index
    %c0_11 = arith.constant 0 : index
    %13 = vector.load %arg7[%c0_10, %c0_11] : memref<8x2xf32, #tpu.memory_space<vmem>>, vector<8x2xf32>
    tpu.vector_store %arg7[%c0_10, %c0_11], %12 {strides = array<i32>} : memref<8x2xf32, #tpu.memory_space<vmem>>, vector<8x2xf32>,
    %c0_12 = arith.constant 0 : index
    %c0_13 = arith.constant 0 : index
    %14 = vector.load %arg8[%c0_12, %c0_13] : memref<8x1xf32, #tpu.memory_space<vmem>>, vector<8x1xf32>
    %15 = arith.addf %14, %10 : vector<8x1xf32>
    %c0_14 = arith.constant 0 : index
    %c0_15 = arith.constant 0 : index
    %16 = vector.load %arg8[%c0_14, %c0_15] : memref<8x1xf32, #tpu.memory_space<vmem>>, vector<8x1xf32>
    tpu.vector_store %arg8[%c0_14, %c0_15], %15 {strides = array<i32>} : memref<8x1xf32, #tpu.memory_space<vmem>>, vector<8x1xf32>,
    %c0_i32_16 = arith.constant 0 : i32
    %17 = arith.cmpi eq, %arg1, %c0_i32_16 : i32
    %18 = arith.extui %17 : i1 to i32
    %c0_i32_17 = arith.constant 0 : i32
    %19 = arith.cmpi ne, %18, %c0_i32_17 : i32
    scf.if %19 {
      %c0_18 = arith.constant 0 : index
      %c0_19 = arith.constant 0 : index
      %20 = vector.load %arg7[%c0_18, %c0_19] : memref<8x2xf32, #tpu.memory_space<vmem>>, vector<8x2xf32>
      %21 = vector.shape_cast %20 : vector<8x2xf32> to vector<1x8x2xf32>
      %cst = arith.constant dense<0.000000e+00> : vector<1xf32>
      %22 = vector.multi_reduction <add>, %21, %cst [1, 2] : vector<1x8x2xf32> to vector<1xf32>
      %23 = vector.shape_cast %22 : vector<1xf32> to vector<1x1x1xf32>
      %24 = vector.extract %23[0, 0, 0] : f32 from vector<1x1x1xf32>
      %c0_20 = arith.constant 0 : index
      %c0_21 = arith.constant 0 : index
      %25 = vector.load %arg8[%c0_20, %c0_21] : memref<8x1xf32, #tpu.memory_space<vmem>>, vector<8x1xf32>
      %26 = vector.shape_cast %25 : vector<8x1xf32> to vector<1x8x1xf32>
      %cst_22 = arith.constant dense<0.000000e+00> : vector<1xf32>
      %27 = vector.multi_reduction <add>, %26, %cst_22 [1, 2] : vector<1x8x1xf32> to vector<1xf32>
      %28 = vector.shape_cast %27 : vector<1xf32> to vector<1x1x1xf32>
      %29 = vector.extract %28[0, 0, 0] : f32 from vector<1x1x1xf32>
      %cst_23 = arith.constant 1.500000e+01 : f32
      %30 = arith.mulf %cst_23, %29 : f32
      %31 = arith.addf %24, %30 : f32
      %cst_24 = arith.constant 0.000000e+00 : f32
      %32 = vector.broadcast %cst_24 : f32 to vector<1x8x128xf32>
      %33 = vector.broadcast %31 : f32 to vector<1x8x128xf32>
      %34 = arith.addf %32, %33 : vector<1x8x128xf32>
      %c0_25 = arith.constant 0 : index
      %c0_26 = arith.constant 0 : index
      %c0_27 = arith.constant 0 : index
      %35 = vector.load %arg6[%c0_25, %c0_26, %c0_27] : memref<1x8x128xf32, #tpu.memory_space<vmem>>, vector<1x8x128xf32>
      tpu.vector_store %arg6[%c0_25, %c0_26, %c0_27], %34 {strides = array<i32>} : memref<1x8x128xf32, #tpu.memory_space<vmem>>, vector<1x8x128xf32>,
    } else {
    }
    return
  }
  func.func @transform_0(%arg0: i32, %arg1: i32) -> (i32, i32) {
    %c1_i32 = arith.constant 1 : i32
    %0 = arith.muli %arg0, %c1_i32 : i32
    %1 = arith.addi %0, %arg1 : i32
    %c0_i32 = arith.constant 0 : i32
    %c0_i32_0 = arith.constant 0 : i32
    return %c0_i32, %1 : i32, i32
  }
  func.func @transform_1(%arg0: i32, %arg1: i32) -> (i32, i32) {
    %c1_i32 = arith.constant 1 : i32
    %0 = arith.muli %arg0, %c1_i32 : i32
    %1 = arith.addi %0, %arg1 : i32
    %c0_i32 = arith.constant 0 : i32
    %c0_i32_0 = arith.constant 0 : i32
    return %c0_i32, %1 : i32, i32
  }
  func.func @transform_2(%arg0: i32, %arg1: i32) -> (i32, i32) {
    %c1_i32 = arith.constant 1 : i32
    %0 = arith.muli %arg0, %c1_i32 : i32
    %1 = arith.addi %0, %arg1 : i32
    %c0_i32 = arith.constant 0 : i32
    %c0_i32_0 = arith.constant 0 : i32
    return %c0_i32, %1 : i32, i32
  }
  func.func @transform_3(%arg0: i32, %arg1: i32) -> (i32, i32) {
    %c1_i32 = arith.constant 1 : i32
    %0 = arith.muli %arg0, %c1_i32 : i32
    %1 = arith.addi %0, %arg1 : i32
    %c0_i32 = arith.constant 0 : i32
    %c0_i32_0 = arith.constant 0 : i32
    return %c0_i32, %1 : i32, i32
  }
  func.func @transform_4(%arg0: i32, %arg1: i32) -> (i32, i32, i32) {
    %c0_i32 = arith.constant 0 : i32
    %c0_i32_0 = arith.constant 0 : i32
    %c0_i32_1 = arith.constant 0 : i32
    return %arg0, %c0_i32, %c0_i32_0 : i32, i32, i32
  }
}

</mosaic_0001>

<bundles_post_ra>
// kernel: tpu_custom_call.1
= control target key start
LH: loop header
LB: loop body
LE: loop exit
PB: predicated region body
PF: predicated region fallthrough
CT: control target
= control target key end

     0   :  { %vm90_vm0 = vcmask 15360   ;;  %vm92_vm1 = vcmask 7168   ;;  %v206_v3 = vmov 0.0   ;;  %s254_s0 = inlined_call_operand.vmem [shape: f32[8,2], index: 0, kind: input, shape index: {}]   ;;  %s255_s1 = inlined_call_operand.vmem [shape: f32[8,2], index: 1, kind: input, shape index: {}]   ;;  %s256_s2 = inlined_call_operand.vmem [shape: f32[8,1], index: 2, kind: input, shape index: {}]   ;;  %s257_s3 = inlined_call_operand.vmem [shape: f32[8,1], index: 3, kind: input, shape index: {}]   ;;  %s258_s4 = inlined_call_operand.hbm [shape: f32[1,8,128], index: 4, kind: output, shape index: {}]  }
   0x1   :  { %v94_v0 = vld [vmem:[%s254_s0] sm:$0xff]  ;;  %91 = vst.msk [vmem:[#allocation2] sm:$0xff] %vm90_vm0, %v206_v3 }
   0x2   :  { %v95_v1 = vld [vmem:[%s255_s1] sm:$0xff]  ;;  %93 = vst.msk [vmem:[#allocation3] sm:$0xff] %vm92_vm1, %v206_v3 }
   0x3   :  { %v98_v2 = vld [vmem:[%s256_s2] sm:$0xff]  ;;  %v96_v4 = vsub.f32 %v94_v0, %v95_v1 }
   0x4   :  { %v99_v5 = vld [vmem:[%s257_s3] sm:$0xff] }
   0x5   :  { %9 = vsyncpa [#allocation5], 0  ;;  %v100_v6 = vsub.f32 %v98_v2, %v99_v5  ;;  %v97_v7 = vand.u32 2147483647, %v96_v4  ;;  %s207_s3 = smov [#allocation4]  }
   0x6   :  { %s146_s23 = sshll.u32 %s207_s3, 4  ;;  %s147_s23 = int_to_ptr.vmem [resolvable:$true] %s146_s23 }
   0x7   :  { %v101_v8 = vand.u32 2147483647, %v100_v6  ;;  %s184_s25 = scalar_lea.vmem %s147_s23, 128  ;;  %p189_p1 = scmp.lt.s32.totalorder %s147_s23, %s147_s23 }
   0x8   :  { %v102_v9 = vld [vmem:[#allocation2] sm:$0xff]  ;;  %p185_p0 = scmp.ne.s32.totalorder %s147_s23, %s184_s25  ;;  %p190_p2 = scmp.lt.s32.totalorder %s184_s25, %s184_s25 }
   0x9   :  { %v106_v10 = vld [vmem:[#allocation3] sm:$0xff]  ;;  %v103_v11 = vadd.f32 %v102_v9, %v97_v7 }
   0xa   :  { %v107_v12 = vadd.f32 %v106_v10, %v101_v8  ;;  %p191_p3 = por %p190_p2, %p189_p1 }
   0xb   :  { %105 = vst.msk [vmem:[#allocation2] sm:$0xff] %vm90_vm0, %v103_v11 }
   0xc   :  { %109 = vst.msk [vmem:[#allocation3] sm:$0xff] %vm92_vm1, %v107_v12  ;;  %p192_p4 = pnand %p191_p3, %p185_p0 }
  0x12   :  { %v113_v13 = vld [vmem:[#allocation2] sm:$0xff] }
  0x13   :  { %v124_v14 = vld [vmem:[#allocation3] sm:$0xff]  ;;  %v114_v15 = vsel %vm90_vm0, %v113_v13, 0.0 }
  0x14   :  { %115 = vadd.xlane.f32.xlu0 %v114_v15  ;;  %v125_v16 = vsel %vm92_vm1, %v124_v14, 0.0 }
  0x18   :  { %126 = vadd.xlane.f32.xlu0 %v125_v16 }
  0x9d   :  { %v116_v17 = vpop.xlane.xlu0 %115 }
  0x9e   :  { %v117_v18 = vrot.slane %v116_v17, 4 }
  0xa0   :  { %v118_v19 = vadd.f32 %v117_v18, %v116_v17 }
  0xa1   :  { %v127_v20 = vpop.xlane.xlu0 %126 }
  0xa2   :  { %v119_v21 = vrot.slane %v118_v19, 2  ;;  %v128_v22 = vrot.slane %v127_v20, 4 }
  0xa4   :  { %v129_v23 = vadd.f32 %v128_v22, %v127_v20  ;;  %v120_v24 = vadd.f32 %v119_v21, %v118_v19 }
  0xa6   :  { %v130_v25 = vrot.slane %v129_v23, 2  ;;  %v121_v26 = vrot.slane %v120_v24, 1 }
  0xa8   :  { %v131_v27 = vadd.f32 %v130_v25, %v129_v23  ;;  %v122_v28 = vadd.f32 %v121_v26, %v120_v24 }
  0xaa   :  { %178 = vpush %v122_v28  ;;  %v132_v29 = vrot.slane %v131_v27, 1 }
  0xac   :  { %v133_v30 = vadd.f32 %v132_v29, %v131_v27 }
  0xae   :  { %180 = vpush %v133_v30 }
  0xdb   :  { %s179_s0 = spop %178 }
  0xdf   :  { %s181_s1 = spop %180 }
  0xe0   :  { %s135_s2 = smul.f32 15.0, %s181_s1 }
  0xe2   :  { %s136_s24 = sadd.f32 %s179_s0, %s135_s2 }
  0xe4   :  { %v137_v31 = vstv %s136_s24 }
  0xe5   :  { %139 = vst [vmem:[#allocation4] sm:$0xff] %v137_v31 }
  0xe6   :  { %195 = shalt.err (!%p192_p4)
}
  0xe7   :  { %149 = dma.vmem_to_hbm [thread:$0]  %s147_s23, 128, %s258_s4, [#allocation5]  }
  0xe8   :  { %204 = dma.done.wait [#allocation5], 128  }
  0xe9   :  { %205 = vsyncadd [#allocation5], 4294967168 }
  0xea   :  { %153 = vsyncpa [#allocation5], 1 }

</bundles_post_ra>
